<compile_context>
chip_gen: v7x
topology: tpu7x:2x2x1
jax: 0.10.0
libtpu: 0.0.40
codegen_flags: <defaults>
</compile_context>

<pallas_src>
import functools

import jax
import jax.numpy as jnp
from jax.experimental import pallas as pl
from jax.experimental.pallas import tpu as pltpu


def _pad_kernel(x_ref, o_ref, *, H, W, p, direction):
    # x_ref: (B, H, W) block in VMEM;  o_ref: (B, H + 2p, W + 2p) block in VMEM.
    x = x_ref[...]

    if p == 0:
        o_ref[...] = x
        return

    Wo = W + 2 * p

    # ---- assemble padded block in registers; one full-tile store at the end ----
    # Horizontal circular wrap: out[..., j] = x[..., (j - p) mod W]
    xw = jnp.concatenate([x[:, :, W - p:], x, x[:, :, :p]], axis=2)   # (B, H, Wo)

    if direction == 'both':
        # Vertical circular wrap: top p rows from the bottom, bottom p from the top.
        padded = jnp.concatenate([xw[:, H - p:, :], xw, xw[:, :p, :]], axis=1)
    else:  # 'horizontal': constant-zero rows top and bottom
        z = jnp.zeros((xw.shape[0], p, Wo), dtype=xw.dtype)
        padded = jnp.concatenate([z, xw, z], axis=1)

    o_ref[...] = padded                                               # single unmasked store


def _tpu_vmem_and_cores():
    """Best-effort query of per-core VMEM capacity and TensorCore count."""
    vmem_bytes = 32 << 20          # conservative fallback (scoped default v6e/v7x)
    num_tc = 1
    try:
        info = pltpu.get_tpu_info()
        vmem_bytes = int(getattr(info, 'vmem_capacity_bytes', vmem_bytes))
    except Exception:
        pass
    try:
        kind = jax.devices()[0].device_kind.lower()
        if 'v7' in kind:           # v7x: 2 TensorCores per chip
            num_tc = 2
    except Exception:
        pass
    return vmem_bytes, num_tc


def _choose_plane_batch(nc, bytes_per_plane, budget, num_tc):
    """Pick the plane-batch B (a divisor of nc) whose double-buffered in+out slab
    fits `budget`.  Single-TC chips: fewest grid steps (largest B).  Multi-TC
    chips: prefer an even number of grid steps >= 2 so every core gets work."""
    max_b = max(1, budget // max(1, bytes_per_plane))
    divisors = [b for b in range(1, nc + 1) if nc % b == 0]
    fitting = [b for b in divisors if b <= max_b] or [1]

    if num_tc <= 1:
        return max(fitting)                      # minimize per-step overhead

    even_steps = [b for b in fitting if (nc // b) % 2 == 0]
    if even_steps:
        return max(even_steps)
    multi_steps = [b for b in fitting if nc // b >= 2]
    if multi_steps:
        return max(multi_steps)
    return max(fitting)


def padding_circular(x, kernel_size, direction='both'):
    """Pallas implementation of PaddingCircular.forward.

    x: (N, C, H, W) array.  Returns (N, C, H + 2p, W + 2p), p = kernel_size // 2.
    """
    if direction not in ('both', 'horizontal'):
        raise ValueError(f"unsupported direction: {direction}")
    p = kernel_size // 2
    N, C, H, W = x.shape
    if p > W or (direction == 'both' and p > H):
        raise ValueError(f"pad_len={p} must be <= the circularly padded dims (H={H}, W={W})")
    Ho, Wo = H + 2 * p, W + 2 * p
    NC = N * C

    itemsize = jnp.dtype(x.dtype).itemsize
    # Per-plane VMEM cost: double-buffered input tile + double-buffered output tile.
    bytes_per_plane = 2 * (H * W + Ho * Wo) * itemsize

    vmem_bytes, num_tc = _tpu_vmem_and_cores()
    budget = max(1 << 20, vmem_bytes // 4)       # leave headroom for compiler scratch
    B = _choose_plane_batch(NC, bytes_per_plane, budget, num_tc)

    x_flat = x.reshape(NC, H, W)
    kernel = functools.partial(_pad_kernel, H=H, W=W, p=p, direction=direction)

    compiler_kwargs = dict(dimension_semantics=("parallel",))
    slab_bytes = B * bytes_per_plane
    if slab_bytes > (12 << 20):
        # Only raise the scoped VMEM limit when the slab actually needs it.
        compiler_kwargs["vmem_limit_bytes"] = int(min(slab_bytes + (4 << 20), vmem_bytes))

    out_flat = pl.pallas_call(
        kernel,
        out_shape=jax.ShapeDtypeStruct((NC, Ho, Wo), x.dtype),
        grid_spec=pltpu.PrefetchScalarGridSpec(
            num_scalar_prefetch=0,
            grid=(NC // B,),
            in_specs=[pl.BlockSpec((B, H, W), lambda i: (i, 0, 0))],
            out_specs=pl.BlockSpec((B, Ho, Wo), lambda i: (i, 0, 0)),
        ),
        compiler_params=pltpu.CompilerParams(**compiler_kwargs),
    )(x_flat)

    return out_flat.reshape(N, C, Ho, Wo)


def _reference(x, kernel_size, direction):
    # Pure-JAX reference mirroring torch.nn.functional.pad semantics.
    p = kernel_size // 2
    if direction == 'both':
        return jnp.pad(x, ((0, 0), (0, 0), (p, p), (p, p)), mode='wrap')
    # horizontal: circular on W, zeros on H
    y = jnp.pad(x, ((0, 0), (0, 0), (0, 0), (p, p)), mode='wrap')
    return jnp.pad(y, ((0, 0), (0, 0), (p, p), (0, 0)), mode='constant')


if __name__ == "__main__":
    key = jax.random.PRNGKey(0)
    # Module has no learnable parameters; only pad_len (= kernel_size // 2).
    N, C, H, W = 2, 4, 16, 16
    x = jax.random.normal(key, (N, C, H, W), dtype=jnp.float32)

    for kernel_size in (1, 3, 5):
        p = kernel_size // 2
        for direction in ('both', 'horizontal'):
            out = padding_circular(x, kernel_size, direction=direction)
            jax.block_until_ready(out)
            ref = _reference(x, kernel_size, direction)
            assert out.shape == (N, C, H + 2 * p, W + 2 * p)
            assert jnp.array_equal(out, ref)

    # Non-square + bf16 coverage (review's correctness note).
    x2 = jax.random.normal(jax.random.PRNGKey(1), (2, 3, 12, 16), dtype=jnp.bfloat16)
    for direction in ('both', 'horizontal'):
        out = padding_circular(x2, 3, direction=direction)
        jax.block_until_ready(out)
        assert jnp.array_equal(out, _reference(x2, 3, direction))

    print("KERNEL_OK")
</pallas_src>

<mosaic_0001>
module attributes {stable_mosaic.version = 11 : i64} {
  func.func @_pad_kernel(%arg0: i32, %arg1: memref<8x16x16xf32, #tpu.memory_space<vmem>>, %arg2: memref<8x16x16xf32, #tpu.memory_space<vmem>>) attributes {dimension_semantics = [#tpu.dimension_semantics<parallel>], iteration_bounds = array<i64: 1>, scalar_prefetch = 0 : i64, scratch_operands = 0 : i64, tpu.core_type = #tpu.core_type<tc>, window_params = [{transform_indices = @transform_0, window_bounds = array<i64: 8, 16, 16>}, {transform_indices = @transform_1, window_bounds = array<i64: 8, 16, 16>}]} {
    %c0 = arith.constant 0 : index
    %c0_0 = arith.constant 0 : index
    %c0_1 = arith.constant 0 : index
    %0 = vector.load %arg1[%c0, %c0_0, %c0_1] : memref<8x16x16xf32, #tpu.memory_space<vmem>>, vector<8x16x16xf32>
    %c0_2 = arith.constant 0 : index
    %c0_3 = arith.constant 0 : index
    %c0_4 = arith.constant 0 : index
    %1 = vector.load %arg2[%c0_2, %c0_3, %c0_4] : memref<8x16x16xf32, #tpu.memory_space<vmem>>, vector<8x16x16xf32>
    tpu.vector_store %arg2[%c0_2, %c0_3, %c0_4], %0 {strides = array<i32>} : memref<8x16x16xf32, #tpu.memory_space<vmem>>, vector<8x16x16xf32>,
    return
  }
  func.func @transform_0(%arg0: i32) -> (i32, i32, i32) {
    %c0_i32 = arith.constant 0 : i32
    %c0_i32_0 = arith.constant 0 : i32
    %c0_i32_1 = arith.constant 0 : i32
    return %arg0, %c0_i32, %c0_i32_0 : i32, i32, i32
  }
  func.func @transform_1(%arg0: i32) -> (i32, i32, i32) {
    %c0_i32 = arith.constant 0 : i32
    %c0_i32_0 = arith.constant 0 : i32
    %c0_i32_1 = arith.constant 0 : i32
    return %arg0, %c0_i32, %c0_i32_0 : i32, i32, i32
  }
}

</mosaic_0001>

<bundles_post_ra>
// kernel: tpu_custom_call.1
= control target key start
LH: loop header
LB: loop body
LE: loop exit
PB: predicated region body
PF: predicated region fallthrough
CT: control target
= control target key end

     0   :  { %6 = vsyncpa [#allocation3], 0  ;;  %s185_s0 = inlined_call_operand.hbm [shape: f32[8,16,16], index: 0, kind: input, shape index: {}]   ;;  %s186_s1 = inlined_call_operand.hbm [shape: f32[8,16,16], index: 1, kind: output, shape index: {}]  }
   0x1   :  { %7 = vsyncpa [#allocation4], 0  ;;  %s125_s6 = smov [#allocation2]   ;;  %s77_s10 = scalar_lea.hbm %s185_s0, 2048 }
   0x2   :  { %s13_s7 = sshll.u32 %s125_s6, 4  ;;  %p78_p0 = scmp.ne.s32.totalorder %s185_s0, %s77_s10  ;;  %s14_s7 = int_to_ptr.vmem [resolvable:$true] %s13_s7 }
   0x3   :  { %p81_p1 = scmp.lt.u32.totalorder %s77_s10, %s185_s0 }
   0x5   :  { %p83_p2 = pnand %p81_p1, %p78_p0 }
   0x7   :  { %86 = shalt.err (!%p83_p2)
}
   0x8   :  { %s87_s15 = scalar_lea.vmem %s14_s7, 2048  ;;  %p92_p4 = scmp.lt.s32.totalorder %s14_s7, %s14_s7 }
   0x9   :  { %p88_p3 = scmp.ne.s32.totalorder %s14_s7, %s87_s15  ;;  %p93_p5 = scmp.lt.s32.totalorder %s87_s15, %s87_s15 }
   0xb   :  { %p94_p6 = por %p93_p5, %p92_p4 }
   0xd   :  { %p95_p7 = pnand %p94_p6, %p88_p3 }
   0xf   :  { %98 = shalt.err (!%p95_p7)
}
  0x10   :  { %s126_s16 = smov 128   ;;  %s127_s17 = smov 8  }
  0x11   :  { %19 = dma.hbm_to_vmem [thread:$0]  %s185_s0, 2048, %s14_s7, [#allocation3], %s126_s16, %s126_s16, %s127_s17  }
  0x12   :  { %121 = dma.done.wait [#allocation3], 2048  }
  0x13   :  { %122 = vsyncadd [#allocation3], 4294965248  ;;  %vm39_vm0 = vcmask 130048   ;;  %v23_v0 = vld [vmem:[#allocation2] sm:$0xff]  ;;  %v24_v1 = vld [vmem:[#allocation2 + $0x8] sm:$0xff]  ;;  %s128_s20 = smov [#allocation5]  }
  0x14   :  { %v25_v2 = vld [vmem:[#allocation2 + $0x10] sm:$0xff]  ;;  %40 = vst.msk [vmem:[#allocation5] sm:$0xff] %vm39_vm0, %v23_v0  ;;  %41 = vst.msk [vmem:[#allocation5 + $0x8] sm:$0xff] %vm39_vm0, %v24_v1  ;;  %v26_v3 = vld [vmem:[#allocation2 + $0x18] sm:$0xff]  ;;  %s61_s21 = sshll.u32 %s128_s20, 4  ;;  %s62_s21 = int_to_ptr.vmem [resolvable:$true] %s61_s21 }
  0x15   :  { %42 = vst.msk [vmem:[#allocation5 + $0x10] sm:$0xff] %vm39_vm0, %v25_v2  ;;  %v27_v4 = vld [vmem:[#allocation2 + $0x20] sm:$0xff]  ;;  %v28_v5 = vld [vmem:[#allocation2 + $0x28] sm:$0xff]  ;;  %43 = vst.msk [vmem:[#allocation5 + $0x18] sm:$0xff] %vm39_vm0, %v26_v3  ;;  %s99_s0 = scalar_lea.vmem %s62_s21, 2048  ;;  %p104_p9 = scmp.lt.s32.totalorder %s62_s21, %s62_s21 }
  0x16   :  { %44 = vst.msk [vmem:[#allocation5 + $0x20] sm:$0xff] %vm39_vm0, %v27_v4  ;;  %45 = vst.msk [vmem:[#allocation5 + $0x28] sm:$0xff] %vm39_vm0, %v28_v5  ;;  %v29_v6 = vld [vmem:[#allocation2 + $0x30] sm:$0xff]  ;;  %v30_v7 = vld [vmem:[#allocation2 + $0x38] sm:$0xff]  ;;  %p100_p8 = scmp.ne.s32.totalorder %s62_s21, %s99_s0  ;;  %p105_p10 = scmp.lt.s32.totalorder %s99_s0, %s99_s0 }
  0x17   :  { %v31_v8 = vld [vmem:[#allocation2 + $0x40] sm:$0xff]  ;;  %46 = vst.msk [vmem:[#allocation5 + $0x30] sm:$0xff] %vm39_vm0, %v29_v6  ;;  %47 = vst.msk [vmem:[#allocation5 + $0x38] sm:$0xff] %vm39_vm0, %v30_v7  ;;  %v32_v9 = vld [vmem:[#allocation2 + $0x48] sm:$0xff] }
  0x18   :  { %48 = vst.msk [vmem:[#allocation5 + $0x40] sm:$0xff] %vm39_vm0, %v31_v8  ;;  %v33_v10 = vld [vmem:[#allocation2 + $0x50] sm:$0xff]  ;;  %v34_v11 = vld [vmem:[#allocation2 + $0x58] sm:$0xff]  ;;  %49 = vst.msk [vmem:[#allocation5 + $0x48] sm:$0xff] %vm39_vm0, %v32_v9  ;;  %p106_p11 = por %p105_p10, %p104_p9 }
  0x19   :  { %50 = vst.msk [vmem:[#allocation5 + $0x50] sm:$0xff] %vm39_vm0, %v33_v10  ;;  %51 = vst.msk [vmem:[#allocation5 + $0x58] sm:$0xff] %vm39_vm0, %v34_v11  ;;  %v35_v12 = vld [vmem:[#allocation2 + $0x60] sm:$0xff]  ;;  %v36_v13 = vld [vmem:[#allocation2 + $0x68] sm:$0xff] }
  0x1a   :  { %v37_v14 = vld [vmem:[#allocation2 + $0x70] sm:$0xff]  ;;  %52 = vst.msk [vmem:[#allocation5 + $0x60] sm:$0xff] %vm39_vm0, %v35_v12  ;;  %53 = vst.msk [vmem:[#allocation5 + $0x68] sm:$0xff] %vm39_vm0, %v36_v13  ;;  %v38_v15 = vld [vmem:[#allocation2 + $0x78] sm:$0xff]  ;;  %p107_p12 = pnand %p106_p11, %p100_p8 }
  0x1b   :  { %54 = vst.msk [vmem:[#allocation5 + $0x70] sm:$0xff] %vm39_vm0, %v37_v14  ;;  %55 = vst.msk [vmem:[#allocation5 + $0x78] sm:$0xff] %vm39_vm0, %v38_v15 }
  0x1c   :  { %110 = shalt.err (!%p107_p12)
}
  0x1d   :  { %s111_s24 = scalar_lea.hbm %s186_s1, 2048 }
  0x1e   :  { %p112_p13 = scmp.ne.s32.totalorder %s186_s1, %s111_s24  ;;  %p115_p0 = scmp.lt.u32.totalorder %s111_s24, %s186_s1 }
  0x20   :  { %p117_p1 = pnand %p115_p0, %p112_p13 }
  0x22   :  { %120 = shalt.err (!%p117_p1)
}
  0x23   :  { %67 = dma.vmem_to_hbm [thread:$0]  %s62_s21, 2048, %s186_s1, [#allocation4], %s126_s16, %s126_s16, %s127_s17  }
  0x24   :  { %123 = dma.done.wait [#allocation4], 2048  }
  0x25   :  { %124 = vsyncadd [#allocation4], 4294965248 }
  0x26   :  { %71 = vsyncpa [#allocation3], 1 }
  0x27   :  { %72 = vsyncpa [#allocation4], 1 }

</bundles_post_ra>
